<compile_context>
chip_gen: v6e
topology: v6e:2x2x1
jax: 0.10.0
libtpu: 0.0.40
codegen_flags: <defaults>
</compile_context>

<pallas_src>
import functools

import jax
import jax.numpy as jnp
from jax.experimental import pallas as pl
from jax.experimental.pallas import tpu as pltpu

_IN_EPS = 1e-5                # InstanceNorm2d default eps
_L2_EPS = 1e-12               # F.normalize default eps
_L2_EPS_SQ = _L2_EPS * _L2_EPS


def _round_up(v, m):
    return -(-v // m) * m


def _hw_params():
    """Generation-aware VMEM limit and tile budgets."""
    vmem_phys = 64 * 1024 * 1024  # conservative default (v7x-sized)
    try:
        info = pltpu.get_tpu_info()
        vmem_phys = int(getattr(info, "vmem_capacity_bytes", vmem_phys))
    except Exception:
        pass
    if vmem_phys >= 96 * 1024 * 1024:
        # v5e / v6e: 128 MiB physical; the scoped default is the real limit.
        vmem_limit = 96 * 1024 * 1024
        tile_f32_budget_elems = (4 * 1024 * 1024) // 4
        max_hw_tile = 4096
    else:
        # v7x: 64 MiB physical VMEM.
        vmem_limit = 48 * 1024 * 1024
        tile_f32_budget_elems = (2 * 1024 * 1024) // 4
        max_hw_tile = 2048
    return vmem_limit, tile_f32_budget_elems, max_hw_tile


# --------------------------------------------------------------------------
# Fused single-pass kernel: whole (1, C, HW) image slab resident in VMEM.
# --------------------------------------------------------------------------
def _fused_kernel(x_ref, w_ref, b_ref, o_ref, *, inv_hw):
    x = x_ref[...].astype(jnp.float32)                       # (1, C, HW)
    mean = jnp.sum(x, axis=-1, keepdims=True) * inv_hw       # (1, C, 1)
    xc = x - mean
    xc2 = xc * xc
    # Centered variance on the resident slab -> no cancellation issue.
    var = jnp.sum(xc2, axis=-1, keepdims=True) * inv_hw
    inv_std = jax.lax.rsqrt(var + _IN_EPS)                   # EUP
    w = w_ref[...].astype(jnp.float32)
    scale = inv_std * w                                      # fold affine weight
    inv_var = inv_std * inv_std
    # ||xin||^2 per pixel where xin = xc * inv_std (reuse xc2).
    sqsum = jnp.sum(xc2 * inv_var, axis=1, keepdims=True)    # (1, 1, HW)
    # 1 / max(||xin||, eps) == rsqrt(max(||xin||^2, eps^2)); EUP, no divide.
    inv_l2 = jax.lax.rsqrt(jnp.maximum(sqsum, _L2_EPS_SQ))
    b = b_ref[...].astype(jnp.float32)
    o_ref[...] = (xc * (scale * inv_l2) + b).astype(o_ref.dtype)


# --------------------------------------------------------------------------
# Two-pass fallback for large images (slab does not fit VMEM).
# --------------------------------------------------------------------------
def _stats_kernel(x_ref, sum_ref, sq_ref, *, hw, tile):
    """Pass 1: accumulate per-(n, c) sum and sum-of-squares over HW tiles."""
    t = pl.program_id(1)

    @pl.when(t == 0)
    def _():
        sum_ref[...] = jnp.zeros_like(sum_ref)
        sq_ref[...] = jnp.zeros_like(sq_ref)

    x = x_ref[...].astype(jnp.float32)                       # (1, C, T)
    if hw % tile != 0:
        # No host-side padding: the tail tile's lanes past HW are undefined,
        # so mask them to exact zeros before accumulating.
        col = jax.lax.broadcasted_iota(jnp.int32, x.shape, dimension=2)
        x = jnp.where(col < (hw - t * tile), x, 0.0)
    sum_ref[...] += jnp.sum(x, axis=-1, keepdims=True)       # (1, C, 1)
    sq_ref[...] += jnp.sum(x * x, axis=-1, keepdims=True)


def _apply_kernel(x_ref, sum_ref, sq_ref, w_ref, b_ref, o_ref, *, inv_hw):
    """Pass 2: instance-norm + channel L2 normalize + affine on one HW tile."""
    x = x_ref[...].astype(jnp.float32)                       # (1, C, T)
    s = sum_ref[...]                                         # (1, C, 1) f32
    sq = sq_ref[...]                                         # (1, C, 1) f32

    mean = s * inv_hw
    # TODO(synk): E[x^2]-mean^2 loses precision when |mean| >> std; a shifted
    # (pivoted) accumulation in pass 1 would fix it.  Fused path is centered.
    var = jnp.maximum(sq * inv_hw - mean * mean, 0.0)
    inv_std = jax.lax.rsqrt(var + _IN_EPS)                   # (1, C, 1), EUP
    w = w_ref[...].astype(jnp.float32)
    scale = inv_std * w
    inv_var = inv_std * inv_std

    xc = x - mean                                            # (1, C, T)
    # TODO(synk): for bf16 I/O this channel reduce could be moved to the idle
    # MXU (dot over C against inv_var) to relieve VPU/XLU slots.
    sqsum = jnp.sum((xc * xc) * inv_var, axis=1, keepdims=True)   # (1, 1, T)
    inv_l2 = jax.lax.rsqrt(jnp.maximum(sqsum, _L2_EPS_SQ))

    b = b_ref[...].astype(jnp.float32)
    # Tail-tile garbage lanes produce garbage lanes only (no cross-lane mixing
    # beyond the per-lane channel reduce); Pallas clips those stores.
    o_ref[...] = (xc * (scale * inv_l2) + b).astype(o_ref.dtype)


# --------------------------------------------------------------------------
# Wrapper
# --------------------------------------------------------------------------
def domain_norm(x, weight, bias, l2=True):
    """x: (N, C, H, W) NCHW; weight/bias: (1, C, 1, 1). Returns (N, C, H, W)."""
    if not l2:
        # TODO(synk): l2=False path (skip F.normalize) not implemented in-kernel.
        raise NotImplementedError("only l2=True variant implemented")

    N, C, H, W = x.shape
    HW = H * W
    inv_hw = 1.0 / HW
    vmem_limit, tile_f32_budget, max_hw_tile = _hw_params()

    x_flat = x.reshape(N, C, HW)
    w_flat = weight.reshape(1, C, 1).astype(jnp.float32)
    b_flat = bias.reshape(1, C, 1).astype(jnp.float32)

    # TODO(synk): for C < 8 the sublane dim pads to 8 (vreg under-occupancy);
    # a multi-image repack would recover it for latency-bound shapes.

    # ---- Fused single-pass path (1R + 1W) when the image slab fits VMEM ----
    itemsize = jnp.dtype(x.dtype).itemsize
    slab_io = C * HW * itemsize
    slab_f32 = C * HW * 4
    # 2x double-buffered input + 2x double-buffered output + ~3 live f32 temps.
    fused_vmem_est = 4 * slab_io + 3 * slab_f32
    if fused_vmem_est <= int(0.9 * vmem_limit):
        out = pl.pallas_call(
            functools.partial(_fused_kernel, inv_hw=inv_hw),
            out_shape=jax.ShapeDtypeStruct((N, C, HW), x.dtype),
            grid_spec=pltpu.PrefetchScalarGridSpec(
                num_scalar_prefetch=0,
                grid=(N,),
                in_specs=[
                    pl.BlockSpec((1, C, HW), lambda n: (n, 0, 0)),
                    pl.BlockSpec((1, C, 1), lambda n: (0, 0, 0)),
                    pl.BlockSpec((1, C, 1), lambda n: (0, 0, 0)),
                ],
                out_specs=pl.BlockSpec((1, C, HW), lambda n: (n, 0, 0)),
            ),
            compiler_params=pltpu.CompilerParams(
                dimension_semantics=("parallel",),
                vmem_limit_bytes=vmem_limit),
        )(x_flat, w_flat, b_flat)
        return out.reshape(N, C, H, W)

    # ---- Large-image fallback: two passes, lane-dense HW tiles, no padding ----
    T = min(_round_up(HW, 128), max_hw_tile,
            max(128, (tile_f32_budget // max(C, 1)) // 128 * 128))
    n_t = -(-HW // T)

    # Pass 1: per-(n, c) sum and sum-of-squares over spatial tiles.
    sums, sqs = pl.pallas_call(
        functools.partial(_stats_kernel, hw=HW, tile=T),
        out_shape=(jax.ShapeDtypeStruct((N, C, 1), jnp.float32),
                   jax.ShapeDtypeStruct((N, C, 1), jnp.float32)),
        grid_spec=pltpu.PrefetchScalarGridSpec(
            num_scalar_prefetch=0,
            grid=(N, n_t),
            in_specs=[pl.BlockSpec((1, C, T), lambda n, t: (n, 0, t))],
            out_specs=(pl.BlockSpec((1, C, 1), lambda n, t: (n, 0, 0)),
                       pl.BlockSpec((1, C, 1), lambda n, t: (n, 0, 0))),
        ),
        compiler_params=pltpu.CompilerParams(
            dimension_semantics=("parallel", "arbitrary"),
            vmem_limit_bytes=vmem_limit),
    )(x_flat)
    # TODO(synk): on v7x with N < 2 the reduction-only grid leaves one
    # TensorCore idle in pass 1; splitting the tile axis into a leading
    # "parallel" factor of 2 plus a wrapper-side partial-sum add would fix it.

    # Pass 2: normalize + channel L2 + affine, tile by tile (output clipped on
    # the tail tile by Pallas, so no padded output / slice round trip).
    out = pl.pallas_call(
        functools.partial(_apply_kernel, inv_hw=inv_hw),
        out_shape=jax.ShapeDtypeStruct((N, C, HW), x.dtype),
        grid_spec=pltpu.PrefetchScalarGridSpec(
            num_scalar_prefetch=0,
            grid=(N, n_t),
            in_specs=[
                pl.BlockSpec((1, C, T), lambda n, t: (n, 0, t)),
                pl.BlockSpec((1, C, 1), lambda n, t: (n, 0, 0)),
                pl.BlockSpec((1, C, 1), lambda n, t: (n, 0, 0)),
                pl.BlockSpec((1, C, 1), lambda n, t: (0, 0, 0)),
                pl.BlockSpec((1, C, 1), lambda n, t: (0, 0, 0)),
            ],
            out_specs=pl.BlockSpec((1, C, T), lambda n, t: (n, 0, t)),
        ),
        compiler_params=pltpu.CompilerParams(
            dimension_semantics=("parallel", "parallel"),
            vmem_limit_bytes=vmem_limit),
    )(x_flat, sums, sqs, w_flat, b_flat)
    return out.reshape(N, C, H, W)


if __name__ == "__main__":
    key = jax.random.PRNGKey(0)
    N, C, H, W = 2, 4, 16, 16
    x = jax.random.normal(key, (N, C, H, W), dtype=jnp.float32)

    # Deterministic parameter init matching DomainNorm.__init__:
    # weight = ones(1, C, 1, 1), bias = zeros(1, C, 1, 1)
    weight = jnp.ones((1, C, 1, 1), dtype=jnp.float32)
    bias = jnp.zeros((1, C, 1, 1), dtype=jnp.float32)

    y = domain_norm(x, weight, bias, l2=True)
    jax.block_until_ready(y)

    # Pure-JAX reference of the same forward pass.
    mean = jnp.mean(x, axis=(2, 3), keepdims=True)
    var = jnp.mean((x - mean) ** 2, axis=(2, 3), keepdims=True)
    xin = (x - mean) / jnp.sqrt(var + _IN_EPS)
    l2n = jnp.maximum(jnp.sqrt(jnp.sum(xin * xin, axis=1, keepdims=True)), _L2_EPS)
    ref = (xin / l2n) * weight + bias
    assert jnp.max(jnp.abs(y - ref)) < 1e-4, "mismatch vs reference"

    print("KERNEL_OK")
</pallas_src>

<mosaic_0001>
module attributes {stable_mosaic.version = 11 : i64} {
  func.func @_fused_kernel(%arg0: i32, %arg1: memref<1x4x256xf32, #tpu.memory_space<vmem>>, %arg2: memref<1x4x1xf32, #tpu.memory_space<vmem>>, %arg3: memref<1x4x1xf32, #tpu.memory_space<vmem>>, %arg4: memref<1x4x256xf32, #tpu.memory_space<vmem>>) attributes {dimension_semantics = [#tpu.dimension_semantics<parallel>], iteration_bounds = array<i64: 2>, scalar_prefetch = 0 : i64, scratch_operands = 0 : i64, tpu.core_type = #tpu.core_type<tc>, window_params = [{transform_indices = @transform_0, window_bounds = array<i64: 1, 4, 256>}, {pipeline_mode = #tpu.pipeline_mode<synchronous>, transform_indices = @transform_1, window_bounds = array<i64: 1, 4, 1>}, {pipeline_mode = #tpu.pipeline_mode<synchronous>, transform_indices = @transform_2, window_bounds = array<i64: 1, 4, 1>}, {transform_indices = @transform_3, window_bounds = array<i64: 1, 4, 256>}]} {
    %c0 = arith.constant 0 : index
    %c0_0 = arith.constant 0 : index
    %c0_1 = arith.constant 0 : index
    %0 = vector.load %arg1[%c0, %c0_0, %c0_1] : memref<1x4x256xf32, #tpu.memory_space<vmem>>, vector<1x4x256xf32>
    %cst = arith.constant dense<0.000000e+00> : vector<1x4xf32>
    %1 = vector.multi_reduction <add>, %0, %cst [2] : vector<1x4x256xf32> to vector<1x4xf32>
    %2 = vector.shape_cast %1 : vector<1x4xf32> to vector<1x4x1xf32>
    %cst_2 = arith.constant 3.906250e-03 : f32
    %3 = vector.broadcast %cst_2 : f32 to vector<1x4x1xf32>
    %4 = arith.mulf %2, %3 : vector<1x4x1xf32>
    %5 = vector.broadcast %4 : vector<1x4x1xf32> to vector<1x4x256xf32>
    %6 = arith.subf %0, %5 : vector<1x4x256xf32>
    %7 = arith.mulf %6, %6 : vector<1x4x256xf32>
    %cst_3 = arith.constant dense<0.000000e+00> : vector<1x4xf32>
    %8 = vector.multi_reduction <add>, %7, %cst_3 [2] : vector<1x4x256xf32> to vector<1x4xf32>
    %9 = vector.shape_cast %8 : vector<1x4xf32> to vector<1x4x1xf32>
    %cst_4 = arith.constant 3.906250e-03 : f32
    %10 = vector.broadcast %cst_4 : f32 to vector<1x4x1xf32>
    %11 = arith.mulf %9, %10 : vector<1x4x1xf32>
    %cst_5 = arith.constant 9.99999974E-6 : f32
    %12 = vector.broadcast %cst_5 : f32 to vector<1x4x1xf32>
    %13 = arith.addf %11, %12 : vector<1x4x1xf32>
    %14 = math.rsqrt %13 : vector<1x4x1xf32>
    %c0_6 = arith.constant 0 : index
    %c0_7 = arith.constant 0 : index
    %c0_8 = arith.constant 0 : index
    %15 = vector.load %arg2[%c0_6, %c0_7, %c0_8] : memref<1x4x1xf32, #tpu.memory_space<vmem>>, vector<1x4x1xf32>
    %16 = arith.mulf %14, %15 : vector<1x4x1xf32>
    %17 = arith.mulf %14, %14 : vector<1x4x1xf32>
    %18 = vector.broadcast %17 : vector<1x4x1xf32> to vector<1x4x256xf32>
    %19 = arith.mulf %7, %18 : vector<1x4x256xf32>
    %cst_9 = arith.constant dense<0.000000e+00> : vector<1x256xf32>
    %20 = vector.multi_reduction <add>, %19, %cst_9 [1] : vector<1x4x256xf32> to vector<1x256xf32>
    %21 = vector.shape_cast %20 : vector<1x256xf32> to vector<1x1x256xf32>
    %cst_10 = arith.constant 1.000000e-24 : f32
    %22 = vector.broadcast %cst_10 : f32 to vector<1x1x256xf32>
    %23 = arith.maximumf %21, %22 : vector<1x1x256xf32>
    %24 = math.rsqrt %23 : vector<1x1x256xf32>
    %c0_11 = arith.constant 0 : index
    %c0_12 = arith.constant 0 : index
    %c0_13 = arith.constant 0 : index
    %25 = vector.load %arg3[%c0_11, %c0_12, %c0_13] : memref<1x4x1xf32, #tpu.memory_space<vmem>>, vector<1x4x1xf32>
    %26 = vector.broadcast %16 : vector<1x4x1xf32> to vector<1x4x256xf32>
    %27 = vector.broadcast %24 : vector<1x1x256xf32> to vector<1x4x256xf32>
    %28 = arith.mulf %26, %27 : vector<1x4x256xf32>
    %29 = arith.mulf %6, %28 : vector<1x4x256xf32>
    %30 = vector.broadcast %25 : vector<1x4x1xf32> to vector<1x4x256xf32>
    %31 = arith.addf %29, %30 : vector<1x4x256xf32>
    %c0_14 = arith.constant 0 : index
    %c0_15 = arith.constant 0 : index
    %c0_16 = arith.constant 0 : index
    %32 = vector.load %arg4[%c0_14, %c0_15, %c0_16] : memref<1x4x256xf32, #tpu.memory_space<vmem>>, vector<1x4x256xf32>
    tpu.vector_store %arg4[%c0_14, %c0_15, %c0_16], %31 {strides = array<i32>} : memref<1x4x256xf32, #tpu.memory_space<vmem>>, vector<1x4x256xf32>,
    return
  }
  func.func @transform_0(%arg0: i32) -> (i32, i32, i32) {
    %c0_i32 = arith.constant 0 : i32
    %c0_i32_0 = arith.constant 0 : i32
    %c0_i32_1 = arith.constant 0 : i32
    return %arg0, %c0_i32, %c0_i32_0 : i32, i32, i32
  }
  func.func @transform_1(%arg0: i32) -> (i32, i32, i32) {
    %c0_i32 = arith.constant 0 : i32
    %c0_i32_0 = arith.constant 0 : i32
    %c0_i32_1 = arith.constant 0 : i32
    %c0_i32_2 = arith.constant 0 : i32
    return %c0_i32, %c0_i32_0, %c0_i32_1 : i32, i32, i32
  }
  func.func @transform_2(%arg0: i32) -> (i32, i32, i32) {
    %c0_i32 = arith.constant 0 : i32
    %c0_i32_0 = arith.constant 0 : i32
    %c0_i32_1 = arith.constant 0 : i32
    %c0_i32_2 = arith.constant 0 : i32
    return %c0_i32, %c0_i32_0, %c0_i32_1 : i32, i32, i32
  }
  func.func @transform_3(%arg0: i32) -> (i32, i32, i32) {
    %c0_i32 = arith.constant 0 : i32
    %c0_i32_0 = arith.constant 0 : i32
    %c0_i32_1 = arith.constant 0 : i32
    return %arg0, %c0_i32, %c0_i32_0 : i32, i32, i32
  }
}

</mosaic_0001>

<bundles_post_ra>
// kernel: tpu_custom_call.1
= control target key start
LH: loop header
LB: loop body
LE: loop exit
PB: predicated region body
PF: predicated region fallthrough
CT: control target
= control target key end

     0   :  { %8 = vsyncpa [#allocation3], 0  ;;  %s714_s0 = inlined_call_operand.hbm [shape: f32[2,4,256], index: 0, kind: input, shape index: {}]   ;;  %s715_s1 = inlined_call_operand.vmem [shape: f32[1,4,1], index: 1, kind: input, shape index: {}]   ;;  %s716_s2 = inlined_call_operand.vmem [shape: f32[1,4,1], index: 2, kind: input, shape index: {}]   ;;  %s717_s3 = inlined_call_operand.hbm [shape: f32[2,4,256], index: 3, kind: output, shape index: {}]  }
   0x1   :  { %10 = vsyncpa [#allocation3 + $0x1], 0 }
   0x2   :  { %11 = vsyncpa [#allocation4], 0 }
   0x3   :  { %13 = vsyncpa [#allocation4 + $0x1], 0  ;;  %s557_s12 = smov 0   ;;  %s559_s13 = smov 0  }
   0x4   :  { %s561_s14 = smov 0   ;;  %s563_s15 = smov 0  }
   0x5 LB: > { %s578_s16 = sadd.s32 4294967295, %s531_s15   ;;  %s366_s17 = sadd.s32 4294967294, %s531_s15   ;;  %s531_s15 = sphi %s563_s15, %s734_s15   ;;  %s527_s14 = sphi %s561_s14, %s733_s14   ;;  %s523_s13 = sphi %s559_s13, %s732_s13   ;;  %s519_s12 = sphi %s557_s12, %s731_s12  }
   0x6   : > { %s582_s18 = sadd.s32 1, %s531_s15   ;;  %s26_s19 = sadd.s32 1, %s527_s14 }
   0x7   : > { %s23_s20 = ssub.s32 %s531_s15, %s582_s18  ;;  %p33_p0 = scmp.ne.s32.totalorder %s527_s14, %s523_s13 }
   0x8   : > { %p24_p1 = scmp.eq.s32.totalorder %s23_s20, 0  ;;  %p34_p2 = scmp.eq.s32.totalorder %s531_s15, 0 }
   0x9   : > { %p39_p3 = scmp.ne.s32.totalorder %s523_s13, %s519_s12  ;;  %p40_p4 = scmp.eq.s32.totalorder %s578_s16, 0 }
   0xa   : > { %s594_s21 = scalar_select %p24_p1, %s527_s14, %s26_s19  }
   0xb   : > { %p596_p5 = por %p34_p2, %p33_p0  ;;  %p600_p6 = por %p40_p4, %p39_p3 }
   0xc   : > { %p105_p7 = scmp.eq.s32.totalorder %s578_s16, 1  ;;  %p111_p8 = scmp.eq.s32.totalorder %s366_s17, 1 }
   0xd   : > { %s721_s23 = scalar_select %p600_p6, 1, 0 }
   0xe   : > { %p394_p10 = scmp.lt.s32.totalorder %s531_s15, 2  ;;  %p607_p11 = por %p105_p7, %p33_p0 }
   0xf   : > { %p611_p12 = por %p111_p8, %p39_p3  ;;  %s137_s26 = sand.u32 1, %s527_s14  }
  0x10   : > { %s722_s24 = scalar_select %p607_p11, 1, 0 }
  0x11   : > { %s723_s25 = scalar_select %p611_p12, 1, 0 }
  0x12   : > { %s380_s27 = sshll.u32 %s531_s15, 7  ;;  %s369_s28 = sshll.u32 %s137_s26, 3 }
  0x13   : > { %s620_s4 = scalar_lea.hbm %s714_s0, %s380_s27  ;;  %s141_s5 = scalar_lea.vmem [#allocation2], %s369_s28 }
  0x14   : > { %s149_s6 = sshll.u32 %s141_s5, 4  ;;  %p624_p13 = pnand %p394_p10, %p596_p5  ;;  %s628_s6 = int_to_ptr.vmem [resolvable:$true] %s149_s6 }
  0x15   : > { %s138_s8 = scalar_lea.sflag [#allocation3], %s137_s26  ;;  %s439_s9 = scalar_lea.hbm %s620_s4, 128 }
  0x16   : > { %p440_p2 = scmp.ne.s32.totalorder %s620_s4, %s439_s9  ;;  %p441_p3 = pneg %p624_p13 }
  0x17   : > { %s444_s17 = scalar_lea.hbm %s714_s0, 256  ;;  %p445_p5 = scmp.lt.s32.totalorder %s620_s4, %s714_s0 }
  0x18   : > { %p442_p4 = pnand %p441_p3, %p440_p2  ;;  %p446_p8 = scmp.lt.s32.totalorder %s444_s17, %s439_s9 }
  0x1a   : > { %p443_p7 = pneg %p442_p4  ;;  %p447_p10 = por %p446_p8, %p445_p5 }
  0x1c   : > { %p448_p9 = pnand %p447_p10, %p443_p7 }
  0x1e   : > { %451 = shalt.err (!%p448_p9)
}
  0x1f   : > { %s452_s22 = scalar_lea.vmem %s628_s6, 128  ;;  %s533_s26 = smov [#allocation2]  }
  0x20   : > { %p453_p0 = scmp.ne.s32.totalorder %s628_s6, %s452_s22  ;;  %s457_s27 = sshll.u32 %s533_s26, 4  ;;  %s458_s27 = int_to_ptr.vmem [resolvable:$false] %s457_s27 }
  0x21   : > { %s459_s28 = scalar_lea.vmem %s458_s27, 256  ;;  %p460_p4 = scmp.lt.s32.totalorder %s628_s6, %s458_s27 }
  0x22   : > { %p455_p1 = pnand %p453_p0, %p441_p3  ;;  %p461_p12 = scmp.lt.s32.totalorder %s459_s28, %s452_s22 }
  0x24   : > { %p456_p2 = pneg %p455_p1  ;;  %p462_p11 = por %p461_p12, %p460_p4 }
  0x26   : > { %p463_p6 = pnand %p462_p11, %p456_p2 }
  0x28   : > { %466 = shalt.err (!%p463_p6)
}
  0x29   : > { %389 = dma.hbm_to_vmem [thread:$0]  (!%p624_p13), %s620_s4, 128, %s628_s6, %s138_s8  }
  0x2a   : > { %p725_p9 = scmp.lt.s32.totalorder %s531_s15, 3  ;;  %p726_p7 = scmp.ge.s32.totalorder %s531_s15, 1 }
  0x2c   : > { %p155_p0 = pnand %p726_p7, %p725_p9 }
  0x2d   : > { %s655_s29 = sand.u32 (!%p155_p0), 1, %s523_s13   ;;  %p727_p6 = scmp.ne.s32.totalorder (!%p155_p0), %s721_s23, 0 }
  0x2e   : > { %158 = sbr.rel (%p155_p0) target bundleno = 512 (0x200), region = 32  ;;  %s373_s30 = sshll.u32 (!%p155_p0), %s655_s29, 3 }
  0x2f   : > { %s161_s5 = scalar_lea.sflag (!%p155_p0), [#allocation3], %s655_s29  ;;  %s164_s7 = scalar_lea.vmem (!%p155_p0), [#allocation2], %s373_s30 }
  0x33   : > { %510 = dma.done.wait (%p727_p6), %s161_s5, 128  }
  0x34   : > { %512 = vsyncadd (%p727_p6), %s161_s5, 4294967168  ;;  %vm191_vm0 = vcmask 1043456   ;;  %v187_v0 = vld [vmem:[%s164_s7] sm:$0xff]  ;;  %v534_v5 = vmov 839922192   ;;  %v202_v7 = vlaneseq  ;;  %v535_v20 = vmov 0  }
  0x35   : > { %v189_v1 = vcombine.high %v187_v0, %v187_v0  ;;  %v192_v2 = vsel %vm191_vm0, %v187_v0, 0.0  ;;  %v200_v6 = vunpack.c.l.s4 %v534_v5  ;;  %430 = vset.pattern.permute.xlu1 %v535_v20  ;;  %431 = vset.pattern.permute.xlu0 %v535_v20  ;;  %v220_v24 = vld [vmem:[%s715_s1] sm:$0xf]  ;;  %s381_s9 = sshll.u32 %s578_s16, 7  ;;  %s186_s10 = scalar_lea.vmem [#allocation5], %s373_s30 }
  0x36   : > { %v203_v9 = vshrl.u32 %v202_v7, 7  ;;  %v254_v27 = vld [vmem:[%s716_s2] sm:$0xf]  ;;  %s296_s11 = sshll.u32 %s186_s10, 4  ;;  %s294_s20 = scalar_lea.hbm %s717_s3, %s381_s9  ;;  %s297_s11 = int_to_ptr.vmem [resolvable:$true] %s296_s11 }
  0x37   : > { %v193_v3 = vsel %vm191_vm0, %v189_v1, 0.0  ;;  %v201_v8 = vunpack.c.0.s8 %v200_v6  ;;  %s282_s22 = scalar_lea.sflag [#allocation4], %s655_s29  ;;  %s467_s26 = scalar_lea.vmem %s297_s11, 128 }
  0x38   : > { %v194_v4 = vadd.f32 %v193_v3, %v192_v2  ;;  %p468_p11 = scmp.ne.s32.totalorder %s297_s11, %s467_s26  ;;  %p728_p12 = scmp.ne.s32.totalorder %s722_s24, 0 }
  0x39   : > { %v204_v10 = vsub.s32 %v201_v8, %v203_v9  ;;  %s536_s27 = smov [#allocation5]  }
  0x3a   : > { %195 = vadd.xlane.f32.xlu0 %v194_v4  ;;  %p469_p13 = pnand %p468_p11, %p728_p12  ;;  %s471_s16 = sshll.u32 %s536_s27, 4  ;;  %s472_s16 = int_to_ptr.vmem [resolvable:$false] %s471_s16 }
  0x3b   : > { %s473_s28 = scalar_lea.vmem %s472_s16, 256  ;;  %p474_p3 = scmp.lt.s32.totalorder %s297_s11, %s472_s16 }
  0x3c   : > { %p470_p1 = pneg %p469_p13  ;;  %p475_p5 = scmp.lt.s32.totalorder %s473_s28, %s467_s26 }
  0x3e   : > { %p476_p8 = por %p475_p5, %p474_p3 }
  0x40   : > { %p477_p10 = pnand %p476_p8, %p470_p1 }
  0xc3   : > { %v196_v11 = vpop.xlane.xlu0 %195 }
  0xc4   : > { %v197_v12 = vmul.f32 0.00390625, %v196_v11 }
  0xc6   : > { %v205_v13 = vrot.slane %v197_v12, %v204_v10 }
  0xc8   : > { %v207_v14 = vsub.f32 %v187_v0, %v205_v13 }
  0xca   : > { %v208_v15 = vmul.f32 %v207_v14, %v207_v14 }
  0xcc   : > { %v210_v16 = vcombine.high %v208_v15, %v208_v15  ;;  %v212_v17 = vsel %vm191_vm0, %v208_v15, 0.0 }
  0xce   : > { %v213_v18 = vsel %vm191_vm0, %v210_v16, 0.0 }
  0xcf   : > { %v214_v19 = vadd.f32 %v213_v18, %v212_v17 }
  0xd1   : > { %215 = vadd.xlane.f32.xlu0 %v214_v19 }
 0x15a   : > { %v216_v21 = vpop.xlane.xlu0 %215 }
 0x15b   : > { %v217_v22 = vmul.f32 0.00390625, %v216_v21 }
 0x15d   : > { %v218_v23 = vadd.f32 1e-05, %v217_v22 }
 0x15f   : > { %433 = vrsqrt.f32 %v218_v23 }
 0x16c   : > { %v434_v25 = vpop.eup %433 }
 0x16d   : > { %v221_v26 = vmul.f32 %v434_v25, %v220_v24  ;;  %v222_v28 = vmul.f32 %v434_v25, %v434_v25 }
 0x16f   : > { %257 = vperm.xlu1 %430, %v221_v26   ;;  %v230_v29 = vrot.slane %v222_v28, %v204_v10 }
 0x171   : > { %v232_v30 = vmul.f32 %v230_v29, %v208_v15 }
 0x173   : > { %269 = vperm.xlu1 %430, %v254_v27   ;;  %v234_v31 = vcombine.high %v232_v30, %v232_v30  ;;  %v236_v32 = vsel %vm191_vm0, %v232_v30, 0.0 }
 0x174   : > { %v237_v34 = vrot.slane %v236_v32, 4 }
 0x175   : > { %v243_v33 = vsel %vm191_vm0, %v234_v31, 0.0 }
 0x176   : > { %v244_v35 = vrot.slane %v243_v33, 4  ;;  %v238_v36 = vadd.f32 %v237_v34, %v236_v32 }
 0x178   : > { %v245_v37 = vadd.f32 %v244_v35, %v243_v33  ;;  %v239_v38 = vrot.slane %v238_v36, 2 }
 0x17a   : > { %v246_v39 = vrot.slane %v245_v37, 2  ;;  %v240_v40 = vadd.f32 %v239_v38, %v238_v36 }
 0x17c   : > { %v247_v41 = vadd.f32 %v246_v39, %v245_v37  ;;  %v241_v42 = vrot.slane %v240_v40, 1 }
 0x17e   : > { %v248_v43 = vrot.slane %v247_v41, 1  ;;  %v242_v44 = vadd.f32 %v241_v42, %v240_v40 }
 0x180   : > { %v249_v45 = vadd.f32 %v248_v43, %v247_v41  ;;  %v250_v46 = vmax.f32 %v242_v44, 1e-24 }
 0x182   : > { %v251_v47 = vmax.f32 %v249_v45, 1e-24  ;;  %435 = vrsqrt.f32 %v250_v46 }
 0x184   : > { %437 = vrsqrt.f32 %v251_v47 }
 0x18f   : > { %v436_v48 = vpop.eup %435 }
 0x191   : > { %v438_v49 = vpop.eup %437 }
 0x1ea   : > { %v258_v50 = vpop.permute.xlu1 %257 }
 0x1eb   : > { %v260_v51 = vmul.f32 %v436_v48, %v258_v50  ;;  %v261_v52 = vmul.f32 %v438_v49, %v258_v50 }
 0x1ed   : > { %v264_v53 = vcombine.low %v260_v51, %v261_v52 }
 0x1ee   : > { %v270_v54 = vpop.permute.xlu1 %269 }
 0x1ef   : > { %v266_v55 = vmul.f32 %v264_v53, %v207_v14  ;;  %v277_v56 = vrot.slane %v270_v54, %v204_v10 }
 0x1f1   : > { %v279_v57 = vadd.f32 %v277_v56, %v266_v55 }
 0x1f3   : > { %280 = vst [vmem:[%s186_s10] sm:$0xff] %v279_v57 }
 0x1f4   : > { %480 = shalt.err (!%p477_p10)
}
 0x1f5   : > { %s481_s30 = scalar_lea.hbm %s294_s20, 128  ;;  %s485_s7 = scalar_lea.hbm %s717_s3, 256 }
 0x1f6   : > { %p482_p2 = scmp.ne.s32.totalorder %s294_s20, %s481_s30  ;;  %p486_p7 = scmp.lt.s32.totalorder %s294_s20, %s717_s3 }
 0x1f7   : > { %p487_p0 = scmp.lt.s32.totalorder %s485_s7, %s481_s30 }
 0x1f8   : > { %p483_p4 = pnand %p482_p2, %p728_p12 }
 0x1f9   : > { %p488_p6 = por %p487_p0, %p486_p7 }
 0x1fa   : > { %p484_p9 = pneg %p483_p4 }
 0x1fc   : > { %p489_p11 = pnand %p488_p6, %p484_p9 }
 0x1fe   : > { %492 = shalt.err (!%p489_p11)
}
 0x1ff   : > { %384 = dma.vmem_to_hbm [thread:$0]  (%p728_p12), %s297_s11, 128, %s294_s20, %s282_s22  }
 0x200 PF: > { %s308_s6 = sand.u32 1, %s519_s12   ;;  %p729_p13 = scmp.ne.s32.totalorder %s723_s25, 0 }
 0x201   : > { %p730_p1 = scmp.ge.s32.totalorder %s531_s15, 2  ;;  %s309_s8 = scalar_lea.sflag [#allocation4], %s308_s6 }
 0x203   : > { %p391_p3 = pnand %p730_p1, %p729_p13 }
 0x205   : > { %p392_p5 = pneg %p391_p3 }
 0x207   : > { %514 = dma.done.wait (%p392_p5), %s309_s8, 128  }
 0x208   : > { %516 = vsyncadd (%p392_p5), %s309_s8, 4294967168  ;;  %p16_p8 = scmp.ge.s32.totalorder %s582_s18, 4   ;;  %s731_s12 = smov %s523_s13 }
 0x209   : > { %s732_s13 = smov %s527_s14  ;;  %s733_s14 = smov %s594_s21 }
 0x20a   : > { %s734_s15 = smov %s582_s18  ;;  %18 = sbr.rel (!%p16_p8) target bundleno = 5 (0x5), region = 77 }
 0x20f   :  { %314 = vsyncpa [#allocation3], 1 }
 0x210   :  { %316 = vsyncpa [#allocation3 + $0x1], 1 }
 0x211   :  { %317 = vsyncpa [#allocation4], 1 }
 0x212   :  { %319 = vsyncpa [#allocation4 + $0x1], 1 }

</bundles_post_ra>
